<compile_context>
chip_gen: v6e
topology: v6e:2x2x1
jax: 0.10.0
libtpu: 0.0.40
codegen_flags: <defaults>
</compile_context>

<pallas_src>
import jax
import jax.numpy as jnp
from jax.experimental import pallas as pl
from jax.experimental.pallas import tpu as pltpu


def _round_up(n: int, m: int) -> int:
    return (n + m - 1) // m * m


def policy_kernel(x_ref, w1_ref, b1_ref, w2_ref, b2_ref, w3_ref, b3_ref, o_ref):
    # x tile: (bb, state_dim) f32; weights bf16; biases f32.
    # Cast to bf16 in-kernel (VPU op, hidden under MXU time) for the MXU-native path.
    x = x_ref[...].astype(jnp.bfloat16)

    # fc1 + ReLU  (bf16 MXU matmul, f32 accumulate, f32 elementwise)
    h1 = jnp.dot(x, w1_ref[...], preferred_element_type=jnp.float32) + b1_ref[...]
    h1 = jnp.maximum(h1, 0.0)

    # fc2 + ReLU
    h2 = jnp.dot(h1.astype(jnp.bfloat16), w2_ref[...],
                 preferred_element_type=jnp.float32) + b2_ref[...]
    h2 = jnp.maximum(h2, 0.0)

    # fc3
    logits = jnp.dot(h2.astype(jnp.bfloat16), w3_ref[...],
                     preferred_element_type=jnp.float32) + b3_ref[...]

    # Numerically stable softmax along last dim (f32).  Exact divide so rows sum to 1.
    m = jnp.max(logits, axis=-1, keepdims=True)
    e = jnp.exp(logits - m)
    o_ref[...] = e / jnp.sum(e, axis=-1, keepdims=True)


def policy_forward(x, kernel_params, *, block_b=1024):
    """x: (B, state_dim) f32. kernel_params: bf16 weights (hidden lane-padded), f32 biases."""
    w1, b1, w2, b2, w3, b3 = kernel_params
    B, S = x.shape
    A = w3.shape[1]

    x = x.astype(jnp.float32)
    block_b = _round_up(block_b, 16)

    # Align batch to 16 rows (bf16 LHS packing).  This pad is at most 15 rows.
    Bp = _round_up(B, 16)
    if Bp != B:
        x = jnp.pad(x, ((0, Bp - B), (0, 0)))

    # Batch tile selection:
    #  - large batches: full block_b tiles (grid >= 2 automatically)
    #  - mid-size batches: split into 2 tiles so both v7x TensorCores get work
    #  - small batches: one tile covering the whole (16-aligned) batch
    if Bp > block_b:
        bb = block_b
    elif Bp > block_b // 2:
        bb = _round_up(pl.cdiv(Bp, 2), 16)
    else:
        bb = Bp
    grid = pl.cdiv(Bp, bb)  # last block may be partial: rows are independent, OOB writes dropped

    resident = lambda shape: pl.BlockSpec(shape, lambda i: (0, 0))

    H1, H2 = w1.shape[1], w2.shape[1]
    flops = 2 * Bp * (S * H1 + H1 * H2 + H2 * A)
    bytes_accessed = (x.size * 4
                      + sum(int(p.size) * p.dtype.itemsize for p in kernel_params)
                      + Bp * A * 4)

    out = pl.pallas_call(
        policy_kernel,
        out_shape=jax.ShapeDtypeStruct((Bp, A), jnp.float32),
        grid_spec=pltpu.PrefetchScalarGridSpec(
            num_scalar_prefetch=0,
            grid=(grid,),
            in_specs=[
                pl.BlockSpec((bb, S), lambda i: (i, 0)),   # x: streams over batch
                resident(w1.shape), resident(b1.shape),    # weights/biases: VMEM-resident
                resident(w2.shape), resident(b2.shape),
                resident(w3.shape), resident(b3.shape),
            ],
            out_specs=pl.BlockSpec((bb, A), lambda i: (i, 0)),
        ),
        compiler_params=pltpu.CompilerParams(
            dimension_semantics=("parallel",),        # megacore sharding on v7x
            vmem_limit_bytes=32 * 1024 * 1024,
        ),
        cost_estimate=pl.CostEstimate(
            flops=flops, transcendentals=Bp * A, bytes_accessed=bytes_accessed),
    )(x, w1, b1, w2, b2, w3, b3)

    return out[:B] if Bp != B else out


def init_params(key, state_dim, action_dim, hidden_dim=64):
    # Deterministic synthetic init mirroring nn.Linear shapes, stored transposed
    # (in_features, out_features) for the kernel's x @ W convention. All f32.
    ks = jax.random.split(key, 6)

    def uniform(k, shape, fan_in):
        bound = 1.0 / jnp.sqrt(fan_in)
        return jax.random.uniform(k, shape, jnp.float32, -bound, bound)

    w1 = uniform(ks[0], (state_dim, hidden_dim), state_dim)
    b1 = uniform(ks[1], (1, hidden_dim), state_dim)
    w2 = uniform(ks[2], (hidden_dim, hidden_dim), hidden_dim)
    b2 = uniform(ks[3], (1, hidden_dim), hidden_dim)
    w3 = uniform(ks[4], (hidden_dim, action_dim), hidden_dim)
    b3 = uniform(ks[5], (1, action_dim), hidden_dim)
    return (w1, b1, w2, b2, w3, b3)


def prepare_params(params, lane=128):
    """Zero-pad hidden dim to a multiple of 128 (lane density) and cast weights to bf16.
    Padding is inert: padded hidden units have zero weights/bias -> ReLU(0)=0 -> zero
    contribution downstream. Biases stay f32 (elementwise work stays f32)."""
    w1, b1, w2, b2, w3, b3 = params
    S, H = w1.shape
    A = w3.shape[1]
    Hp = _round_up(H, lane)

    w1p = jnp.zeros((S, Hp), jnp.float32).at[:, :H].set(w1)
    b1p = jnp.zeros((1, Hp), jnp.float32).at[:, :H].set(b1)
    w2p = jnp.zeros((Hp, Hp), jnp.float32).at[:H, :H].set(w2)
    b2p = jnp.zeros((1, Hp), jnp.float32).at[:, :H].set(b2)
    w3p = jnp.zeros((Hp, A), jnp.float32).at[:H, :].set(w3)

    return (w1p.astype(jnp.bfloat16), b1p,
            w2p.astype(jnp.bfloat16), b2p,
            w3p.astype(jnp.bfloat16), b3)


def _reference(x, params):
    # Pure-JAX f32 reference mirroring the PyTorch module exactly.
    w1, b1, w2, b2, w3, b3 = params
    h = jnp.maximum(x @ w1 + b1, 0.0)
    h = jnp.maximum(h @ w2 + b2, 0.0)
    return jax.nn.softmax(h @ w3 + b3, axis=-1)


if __name__ == "__main__":
    key = jax.random.PRNGKey(0)
    state_dim, action_dim, hidden_dim = 16, 6, 64

    pkey, xkey, xkey2 = jax.random.split(key, 3)
    params = init_params(pkey, state_dim, action_dim, hidden_dim)   # f32, unpadded
    kparams = prepare_params(params)                                # bf16 weights, padded hidden

    # Small case (batch=8): single grid step (batch aligned up to 16 internally).
    x = jax.random.normal(xkey, (8, state_dim), jnp.float32)
    probs = jax.block_until_ready(policy_forward(x, kparams))
    ref = _reference(x, params)
    # bf16 matmul inputs -> compare at a bf16-appropriate tolerance.
    assert probs.shape == ref.shape, "shape mismatch"
    assert jnp.allclose(probs, ref, atol=5e-3, rtol=0.0), "mismatch vs f32 reference (small)"
    assert jnp.allclose(jnp.sum(probs, axis=-1), 1.0, atol=1e-3), "rows must sum to 1 (small)"

    # Larger, non-multiple batch: exercises multi-step grid + ragged last block.
    x2 = jax.random.normal(xkey2, (300, state_dim), jnp.float32)
    probs2 = jax.block_until_ready(policy_forward(x2, kparams, block_b=128))
    ref2 = _reference(x2, params)
    assert probs2.shape == ref2.shape, "shape mismatch (large)"
    assert jnp.allclose(probs2, ref2, atol=5e-3, rtol=0.0), "mismatch vs f32 reference (large)"
    assert jnp.allclose(jnp.sum(probs2, axis=-1), 1.0, atol=1e-3), "rows must sum to 1 (large)"

    print("KERNEL_OK")
</pallas_src>

<mosaic_0001>
module attributes {stable_mosaic.version = 11 : i64} {
  func.func @policy_kernel(%arg0: i32, %arg1: memref<16x16xf32, #tpu.memory_space<vmem>>, %arg2: memref<16x128xbf16, #tpu.memory_space<vmem>>, %arg3: memref<1x128xf32, #tpu.memory_space<vmem>>, %arg4: memref<128x128xbf16, #tpu.memory_space<vmem>>, %arg5: memref<1x128xf32, #tpu.memory_space<vmem>>, %arg6: memref<128x6xbf16, #tpu.memory_space<vmem>>, %arg7: memref<1x6xf32, #tpu.memory_space<vmem>>, %arg8: memref<16x6xf32, #tpu.memory_space<vmem>>) attributes {dimension_semantics = [#tpu.dimension_semantics<parallel>], iteration_bounds = array<i64: 1>, scalar_prefetch = 0 : i64, scratch_operands = 0 : i64, tpu.core_type = #tpu.core_type<tc>, window_params = [{transform_indices = @transform_0, window_bounds = array<i64: 16, 16>}, {pipeline_mode = #tpu.pipeline_mode<synchronous>, transform_indices = @transform_1, window_bounds = array<i64: 16, 128>}, {pipeline_mode = #tpu.pipeline_mode<synchronous>, transform_indices = @transform_2, window_bounds = array<i64: 1, 128>}, {pipeline_mode = #tpu.pipeline_mode<synchronous>, transform_indices = @transform_3, window_bounds = array<i64: 128, 128>}, {pipeline_mode = #tpu.pipeline_mode<synchronous>, transform_indices = @transform_4, window_bounds = array<i64: 1, 128>}, {pipeline_mode = #tpu.pipeline_mode<synchronous>, transform_indices = @transform_5, window_bounds = array<i64: 128, 6>}, {pipeline_mode = #tpu.pipeline_mode<synchronous>, transform_indices = @transform_6, window_bounds = array<i64: 1, 6>}, {transform_indices = @transform_7, window_bounds = array<i64: 16, 6>}]} {
    %c0 = arith.constant 0 : index
    %c0_0 = arith.constant 0 : index
    %0 = vector.load %arg1[%c0, %c0_0] : memref<16x16xf32, #tpu.memory_space<vmem>>, vector<16x16xf32>
    %1 = arith.truncf %0 : vector<16x16xf32> to vector<16x16xbf16>
    %c0_1 = arith.constant 0 : index
    %c0_2 = arith.constant 0 : index
    %2 = vector.load %arg2[%c0_1, %c0_2] : memref<16x128xbf16, #tpu.memory_space<vmem>>, vector<16x128xbf16>
    %cst = arith.constant dense<0.000000e+00> : vector<16x128xf32>
    %3 = tpu.matmul %1, %2, %cst {dimension_numbers = #tpu.dot_dimension_numbers<[1], [0], [0], [1], [0, 0, 1, 1], [], []>} : vector<16x16xbf16>, vector<16x128xbf16>, vector<16x128xf32> -> vector<16x128xf32>
    %c0_3 = arith.constant 0 : index
    %c0_4 = arith.constant 0 : index
    %4 = vector.load %arg3[%c0_3, %c0_4] : memref<1x128xf32, #tpu.memory_space<vmem>>, vector<1x128xf32>
    %5 = vector.broadcast %4 : vector<1x128xf32> to vector<16x128xf32>
    %6 = arith.addf %3, %5 : vector<16x128xf32>
    %cst_5 = arith.constant 0.000000e+00 : f32
    %7 = vector.broadcast %cst_5 : f32 to vector<16x128xf32>
    %8 = arith.maximumf %6, %7 : vector<16x128xf32>
    %9 = arith.truncf %8 : vector<16x128xf32> to vector<16x128xbf16>
    %c0_6 = arith.constant 0 : index
    %c0_7 = arith.constant 0 : index
    %10 = vector.load %arg4[%c0_6, %c0_7] : memref<128x128xbf16, #tpu.memory_space<vmem>>, vector<128x128xbf16>
    %cst_8 = arith.constant dense<0.000000e+00> : vector<16x128xf32>
    %11 = tpu.matmul %9, %10, %cst_8 {dimension_numbers = #tpu.dot_dimension_numbers<[1], [0], [0], [1], [0, 0, 1, 1], [], []>} : vector<16x128xbf16>, vector<128x128xbf16>, vector<16x128xf32> -> vector<16x128xf32>
    %c0_9 = arith.constant 0 : index
    %c0_10 = arith.constant 0 : index
    %12 = vector.load %arg5[%c0_9, %c0_10] : memref<1x128xf32, #tpu.memory_space<vmem>>, vector<1x128xf32>
    %13 = vector.broadcast %12 : vector<1x128xf32> to vector<16x128xf32>
    %14 = arith.addf %11, %13 : vector<16x128xf32>
    %cst_11 = arith.constant 0.000000e+00 : f32
    %15 = vector.broadcast %cst_11 : f32 to vector<16x128xf32>
    %16 = arith.maximumf %14, %15 : vector<16x128xf32>
    %17 = arith.truncf %16 : vector<16x128xf32> to vector<16x128xbf16>
    %c0_12 = arith.constant 0 : index
    %c0_13 = arith.constant 0 : index
    %18 = vector.load %arg6[%c0_12, %c0_13] : memref<128x6xbf16, #tpu.memory_space<vmem>>, vector<128x6xbf16>
    %cst_14 = arith.constant dense<0.000000e+00> : vector<16x6xf32>
    %19 = tpu.matmul %17, %18, %cst_14 {dimension_numbers = #tpu.dot_dimension_numbers<[1], [0], [0], [1], [0, 0, 1, 1], [], []>} : vector<16x128xbf16>, vector<128x6xbf16>, vector<16x6xf32> -> vector<16x6xf32>
    %c0_15 = arith.constant 0 : index
    %c0_16 = arith.constant 0 : index
    %20 = vector.load %arg7[%c0_15, %c0_16] : memref<1x6xf32, #tpu.memory_space<vmem>>, vector<1x6xf32>
    %21 = vector.broadcast %20 : vector<1x6xf32> to vector<16x6xf32>
    %22 = arith.addf %19, %21 : vector<16x6xf32>
    %cst_17 = arith.constant dense<0xFF800000> : vector<16xf32>
    %23 = vector.multi_reduction <maximumf>, %22, %cst_17 [1] : vector<16x6xf32> to vector<16xf32>
    %24 = vector.shape_cast %23 : vector<16xf32> to vector<16x1xf32>
    %25 = vector.broadcast %24 : vector<16x1xf32> to vector<16x6xf32>
    %26 = arith.subf %22, %25 : vector<16x6xf32>
    %27 = math.exp %26 : vector<16x6xf32>
    %cst_18 = arith.constant dense<0.000000e+00> : vector<16xf32>
    %28 = vector.multi_reduction <add>, %27, %cst_18 [1] : vector<16x6xf32> to vector<16xf32>
    %29 = vector.shape_cast %28 : vector<16xf32> to vector<16x1xf32>
    %30 = vector.broadcast %29 : vector<16x1xf32> to vector<16x6xf32>
    %31 = arith.divf %27, %30 : vector<16x6xf32>
    %c0_19 = arith.constant 0 : index
    %c0_20 = arith.constant 0 : index
    %32 = vector.load %arg8[%c0_19, %c0_20] : memref<16x6xf32, #tpu.memory_space<vmem>>, vector<16x6xf32>
    tpu.vector_store %arg8[%c0_19, %c0_20], %31 {strides = array<i32>} : memref<16x6xf32, #tpu.memory_space<vmem>>, vector<16x6xf32>,
    return
  }
  func.func @transform_0(%arg0: i32) -> (i32, i32) {
    %c0_i32 = arith.constant 0 : i32
    %c0_i32_0 = arith.constant 0 : i32
    return %arg0, %c0_i32 : i32, i32
  }
  func.func @transform_1(%arg0: i32) -> (i32, i32) {
    %c0_i32 = arith.constant 0 : i32
    %c0_i32_0 = arith.constant 0 : i32
    %c0_i32_1 = arith.constant 0 : i32
    return %c0_i32, %c0_i32_0 : i32, i32
  }
  func.func @transform_2(%arg0: i32) -> (i32, i32) {
    %c0_i32 = arith.constant 0 : i32
    %c0_i32_0 = arith.constant 0 : i32
    %c0_i32_1 = arith.constant 0 : i32
    return %c0_i32, %c0_i32_0 : i32, i32
  }
  func.func @transform_3(%arg0: i32) -> (i32, i32) {
    %c0_i32 = arith.constant 0 : i32
    %c0_i32_0 = arith.constant 0 : i32
    %c0_i32_1 = arith.constant 0 : i32
    return %c0_i32, %c0_i32_0 : i32, i32
  }
  func.func @transform_4(%arg0: i32) -> (i32, i32) {
    %c0_i32 = arith.constant 0 : i32
    %c0_i32_0 = arith.constant 0 : i32
    %c0_i32_1 = arith.constant 0 : i32
    return %c0_i32, %c0_i32_0 : i32, i32
  }
  func.func @transform_5(%arg0: i32) -> (i32, i32) {
    %c0_i32 = arith.constant 0 : i32
    %c0_i32_0 = arith.constant 0 : i32
    %c0_i32_1 = arith.constant 0 : i32
    return %c0_i32, %c0_i32_0 : i32, i32
  }
  func.func @transform_6(%arg0: i32) -> (i32, i32) {
    %c0_i32 = arith.constant 0 : i32
    %c0_i32_0 = arith.constant 0 : i32
    %c0_i32_1 = arith.constant 0 : i32
    return %c0_i32, %c0_i32_0 : i32, i32
  }
  func.func @transform_7(%arg0: i32) -> (i32, i32) {
    %c0_i32 = arith.constant 0 : i32
    %c0_i32_0 = arith.constant 0 : i32
    return %arg0, %c0_i32 : i32, i32
  }
}

</mosaic_0001>

<bundles_post_ra>
// kernel: tpu_custom_call.1
= control target key start
LH: loop header
LB: loop body
LE: loop exit
PB: predicated region body
PF: predicated region fallthrough
CT: control target
= control target key end

     0   :  { %12 = vsyncpa [#allocation3], 0  ;;  %s683_s0 = inlined_call_operand.hbm [shape: f32[16,16], index: 0, kind: input, shape index: {}]   ;;  %s684_s1 = inlined_call_operand.vmem [shape: bf16[16,128], index: 1, kind: input, shape index: {}]   ;;  %s685_s2 = inlined_call_operand.vmem [shape: f32[1,128], index: 2, kind: input, shape index: {}]   ;;  %s686_s3 = inlined_call_operand.vmem [shape: bf16[128,128], index: 3, kind: input, shape index: {}]   ;;  %s687_s4 = inlined_call_operand.hbm [shape: f32[1,128], index: 4, kind: input, shape index: {}]   ;;  %s688_s5 = inlined_call_operand.vmem [shape: bf16[128,6], index: 5, kind: input, shape index: {}]   ;;  %s689_s6 = inlined_call_operand.vmem [shape: f32[1,6], index: 6, kind: input, shape index: {}]   ;;  %s690_s7 = inlined_call_operand.vmem [shape: f32[16,6], index: 7, kind: output, shape index: {}]  }
   0x1   :  { %13 = vsyncpa [#allocation5], 0  ;;  %s539_s24 = smov [#allocation2]  }
   0x2   :  { %s19_s25 = sshll.u32 %s539_s24, 4  ;;  %s20_s25 = int_to_ptr.vmem [resolvable:$true] %s19_s25 }
   0x3   :  { %s503_s26 = scalar_lea.vmem %s20_s25, 256  ;;  %p508_p1 = scmp.lt.s32.totalorder %s20_s25, %s20_s25 }
   0x4   :  { %p504_p0 = scmp.ne.s32.totalorder %s20_s25, %s503_s26  ;;  %p509_p2 = scmp.lt.s32.totalorder %s503_s26, %s503_s26 }
   0x6   :  { %p510_p3 = por %p509_p2, %p508_p1 }
   0x8   :  { %p511_p4 = pnand %p510_p3, %p504_p0 }
   0xa   :  { %514 = shalt.err (!%p511_p4)
}
   0xb   :  { %s540_s27 = smov 128   ;;  %s541_s28 = smov 8  }
   0xc   :  { %25 = dma.hbm_to_vmem [thread:$0]  %s683_s0, 256, %s20_s25, [#allocation3], %s540_s27, %s540_s27, %s541_s28  }
   0xd   :  { %s542_s8 = smov [#allocation4]  }
   0xe   :  { %s38_s9 = sshll.u32 %s542_s8, 4  ;;  %s39_s9 = int_to_ptr.vmem [resolvable:$true] %s38_s9 }
   0xf   :  { %s523_s10 = scalar_lea.vmem %s39_s9, 16  ;;  %s527_s11 = scalar_lea.vmem %s39_s9, 32 }
  0x10   :  { %p524_p5 = scmp.ne.s32.totalorder %s39_s9, %s523_s10  ;;  %p528_p6 = scmp.lt.s32.totalorder %s39_s9, %s39_s9 }
  0x11   :  { %p529_p7 = scmp.lt.s32.totalorder %s527_s11, %s523_s10 }
  0x13   :  { %p530_p8 = por %p529_p7, %p528_p6 }
  0x15   :  { %p531_p9 = pnand %p530_p8, %p524_p5 }
  0x17   :  { %534 = shalt.err (!%p531_p9)
}
  0x18   :  { %41 = dma.hbm_to_vmem [thread:$0]  %s687_s4, 16, %s39_s9, [#allocation5]  }
  0x19   :  { %535 = dma.done.wait [#allocation3], 256  }
  0x1a   :  { %536 = vsyncadd [#allocation3], 4294967040 }
  0x1b   :  { %537 = dma.done.wait [#allocation5], 16  }
  0x1c   :  { %538 = vsyncadd [#allocation5], 4294967280  ;;  %v543_v0 = vmov 0.0   ;;  %vm544_vm0 = vmmov 0   ;;  %v470_v1 = vld [vmem:[%s684_s1] sm:$0xff]   ;;  %v54_v3 = vld [vmem:[#allocation2 + $0x8] sm:$0xff] }
  0x1d   :  { %418 = vmatprep.subr.bf16.mxu0 %v543_v0  ;;  %420 = vmatprep.mubr.msk.bf16.mxu0 %vm544_vm0, %v543_v0  ;;  %v53_v2 = vld [vmem:[#allocation2] sm:$0xff]  ;;  %vm71_vm1 = vcmask 130048   ;;  %v471_v5 = vld [vmem:[%s686_s3 + $0x38] sm:$0xff]   ;;  %v472_v6 = vld [vmem:[%s686_s3 + $0x30] sm:$0xff]   ;;  %vm346_vm2 = vcmask 48128  }
  0x1e   :  { %424 = vmatprep.subr.bf16.mxu1 %v543_v0  ;;  %440 = vmatprep.mubr.msk.bf16.mxu1 %vm544_vm0, %v543_v0  ;;  %v55_v4 = vpack.c.bf16 %v54_v3, %v53_v2  ;;  %v473_v7 = vld [vmem:[%s686_s3 + $0x28] sm:$0xff]   ;;  %v474_v8 = vld [vmem:[%s686_s3 + $0x20] sm:$0xff]   ;;  %v475_v9 = vld [vmem:[%s686_s3 + $0x18] sm:$0xff]  }
  0x1f   :  { %419 = vmatpush3.bf16.msra.mxu0 %v470_v1  ;;  %425 = vmatpush3.bf16.msra.mxu1 %v471_v5  ;;  %v476_v10 = vld [vmem:[%s686_s3 + $0x10] sm:$0xff]   ;;  %v477_v11 = vld [vmem:[%s686_s3 + $0x8] sm:$0xff]   ;;  %v478_v12 = vld [vmem:[%s686_s3] sm:$0xff]  }
  0x20   :  { %444 = vmatprep.subr.bf16.mxu0 %v543_v0  ;;  %426 = vmatprep.subr.bf16.mxu1 %v543_v0  ;;  %v479_v13 = vld [vmem:[%s688_s5 + $0x38] sm:$0xff]   ;;  %v480_v14 = vld [vmem:[%s688_s5 + $0x30] sm:$0xff]   ;;  %v481_v15 = vld [vmem:[%s688_s5 + $0x28] sm:$0xff]  }
  0x21   :  { %v482_v16 = vld [vmem:[%s688_s5 + $0x20] sm:$0xff]   ;;  %v483_v17 = vld [vmem:[%s688_s5 + $0x18] sm:$0xff]   ;;  %v484_v28 = vld [vmem:[%s688_s5 + $0x10] sm:$0xff]  }
  0x22   :  { %421 = vmatmul.mubr.msk.bf16.vlgmr.msra.gmra.mxu0 %vm71_vm1, %v55_v4  ;;  %v377_v18 = vld [vmem:[%s685_s2] ss:$0 sm:$0xff]  ;;  %v485_v29 = vld [vmem:[%s688_s5 + $0x8] sm:$0xff]   ;;  %v380_v31 = vld [vmem:[#allocation4] ss:$0 sm:$0xff] }
  0x23   :  { %460 = vmatprep.mubr.msk.bf16.mxu0 %vm544_vm0, %v543_v0  ;;  %427 = vmatpush3.bf16.msra.mxu1 %v472_v6  ;;  %v486_v30 = vld [vmem:[%s688_s5] sm:$0xff]  }
  0x24   :  { %428 = vmatprep.subr.bf16.mxu1 %v543_v0  ;;  %445 = vmatpush3.bf16.msra.mxu0 %v479_v13  ;;  %v389_v41 = vld [vmem:[%s689_s6] ss:$0 sm:$0xff] }
  0x25   :  { %446 = vmatprep.subr.bf16.mxu0 %v543_v0 }
  0x27   :  { %429 = vmatpush3.bf16.msra.mxu1 %v473_v7 }
  0x28   :  { %430 = vmatprep.subr.bf16.mxu1 %v543_v0  ;;  %447 = vmatpush3.bf16.msra.mxu0 %v480_v14 }
  0x29   :  { %448 = vmatprep.subr.bf16.mxu0 %v543_v0 }
  0x2b   :  { %431 = vmatpush3.bf16.msra.mxu1 %v474_v8 }
  0x2c   :  { %432 = vmatprep.subr.bf16.mxu1 %v543_v0  ;;  %449 = vmatpush3.bf16.msra.mxu0 %v481_v15 }
  0x2d   :  { %450 = vmatprep.subr.bf16.mxu0 %v543_v0 }
  0x2f   :  { %433 = vmatpush3.bf16.msra.mxu1 %v475_v9 }
  0x30   :  { %434 = vmatprep.subr.bf16.mxu1 %v543_v0  ;;  %451 = vmatpush3.bf16.msra.mxu0 %v482_v16 }
  0x31   :  { %452 = vmatprep.subr.bf16.mxu0 %v543_v0 }
  0x33   :  { %435 = vmatpush3.bf16.msra.mxu1 %v476_v10 }
  0x34   :  { %436 = vmatprep.subr.bf16.mxu1 %v543_v0  ;;  %453 = vmatpush3.bf16.msra.mxu0 %v483_v17 }
  0x35   :  { %454 = vmatprep.subr.bf16.mxu0 %v543_v0 }
  0x37   :  { %437 = vmatpush3.bf16.msra.mxu1 %v477_v11 }
  0x38   :  { %438 = vmatprep.subr.bf16.mxu1 %v543_v0  ;;  %455 = vmatpush3.bf16.msra.mxu0 %v484_v28 }
  0x39   :  { %456 = vmatprep.subr.bf16.mxu0 %v543_v0 }
  0x3b   :  { %439 = vmatpush3.bf16.msra.mxu1 %v478_v12 }
  0x3c   :  { %457 = vmatpush3.bf16.msra.mxu0 %v485_v29 }
  0x3d   :  { %458 = vmatprep.subr.bf16.mxu0 %v543_v0 }
  0x40   :  { %459 = vmatpush3.bf16.msra.mxu0 %v486_v30 }
  0xe2   :  { %v109_v19 = vpop.f32.mrf.mxu0 }
  0xe3   :  { %v110_v21 = vadd.f32 %v377_v18, %v109_v19 }
  0xe4   :  { %v422_v20 = vpop.f32.mrf.mxu0 }
  0xe5   :  { %v116_v25 = vmax.f32 %v110_v21, 0.0 }
  0xe6   :  { %v112_v22 = vpop.f32.mrf.mxu0 }
  0xe7   :  { %v113_v23 = vadd.f32 %v377_v18, %v112_v22 }
  0xe8   :  { %v423_v24 = vpop.f32.mrf.mxu0 }
  0xe9   :  { %v117_v26 = vmax.f32 %v113_v23, 0.0 }
  0xeb   :  { %v118_v27 = vpack.c.bf16 %v117_v26, %v116_v25 }
  0xed   :  { %441 = vmatmul.mubr.bf16.vlgmr.msra.gmra.mxu1 %v118_v27 }
 0x1ad   :  { %v224_v32 = vpop.f32.mrf.mxu1 }
 0x1ae   :  { %v225_v34 = vadd.f32 %v380_v31, %v224_v32 }
 0x1af   :  { %v442_v33 = vpop.f32.mrf.mxu1 }
 0x1b0   :  { %v231_v38 = vmax.f32 %v225_v34, 0.0 }
 0x1b1   :  { %v227_v35 = vpop.f32.mrf.mxu1 }
 0x1b2   :  { %v228_v36 = vadd.f32 %v380_v31, %v227_v35 }
 0x1b3   :  { %v443_v37 = vpop.f32.mrf.mxu1 }
 0x1b4   :  { %v232_v39 = vmax.f32 %v228_v36, 0.0 }
 0x1b6   :  { %v233_v40 = vpack.c.bf16 %v232_v39, %v231_v38 }
 0x1b8   :  { %461 = vmatmul.mubr.bf16.vlgmr.msra.gmra.mxu0 %v233_v40 }
 0x278   :  { %v339_v42 = vpop.f32.mrf.mxu0 }
 0x279   :  { %v340_v43 = vadd.f32 %v389_v41, %v339_v42 }
 0x27a   :  { %v462_v44 = vpop.f32.mrf.mxu0 }
 0x27b   :  { %v347_v45 = vsel %vm346_vm2, %v340_v43, -inf }
 0x27c   :  { %348 = vmax.xlane.f32.xlu0 %v347_v45  ;;  %v342_v46 = vpop.f32.mrf.mxu0 }
 0x27d   :  { %v343_v47 = vadd.f32 %v389_v41, %v342_v46 }
 0x27e   :  { %v463_v48 = vpop.f32.mrf.mxu0 }
 0x27f   :  { %v350_v49 = vsel %vm346_vm2, %v343_v47, -inf }
 0x280   :  { %351 = vmax.xlane.f32.xlu0 %v350_v49 }
 0x305   :  { %v349_v50 = vpop.xlane.xlu0 %348 }
 0x306   :  { %v353_v51 = vsub.f32 %v340_v43, %v349_v50 }
 0x308   :  { %v355_v52 = vmul.f32 1.442695, %v353_v51 }
 0x309   :  { %v352_v53 = vpop.xlane.xlu0 %351 }
 0x30a   :  { %487 = vpow2.f32 %v355_v52  ;;  %v354_v54 = vsub.f32 %v343_v47, %v352_v53 }
 0x30c   :  { %v357_v55 = vmul.f32 1.442695, %v354_v54 }
 0x30e   :  { %489 = vpow2.f32 %v357_v55 }
 0x317   :  { %v488_v56 = vpop.eup %487 }
 0x318   :  { %v359_v57 = vsel %vm346_vm2, %v488_v56, 0.0 }
 0x319   :  { %360 = vadd.xlane.f32.xlu1 %v359_v57 }
 0x31b   :  { %v490_v58 = vpop.eup %489 }
 0x31c   :  { %v362_v59 = vsel %vm346_vm2, %v490_v58, 0.0 }
 0x31d   :  { %363 = vadd.xlane.f32.xlu1 %v362_v59 }
 0x3a2   :  { %v361_v60 = vpop.xlane.xlu1 %360 }
 0x3a3   :  { %491 = vrcp.f32 %v361_v60 }
 0x3a6   :  { %v364_v61 = vpop.xlane.xlu1 %363 }
 0x3a7   :  { %493 = vrcp.f32 %v364_v61 }
 0x3b0   :  { %v492_v62 = vpop.eup %491 }
 0x3b1   :  { %v366_v63 = vmul.f32 %v492_v62, %v488_v56 }
 0x3b3   :  { %369 = vst.msk [vmem:[%s690_s7] sm:$0xff] %vm346_vm2, %v366_v63 }
 0x3b4   :  { %v494_v0 = vpop.eup %493 }
 0x3b5   :  { %v368_v1 = vmul.f32 %v494_v0, %v490_v58 }
 0x3b7   :  { %370 = vst.msk [vmem:[%s690_s7 + $0x8] sm:$0xff] %vm346_vm2, %v368_v1 }
 0x3b8   :  { %375 = vsyncpa [#allocation3], 1 }
 0x3b9   :  { %376 = vsyncpa [#allocation5], 1 }

</bundles_post_ra>
